<compile_context>
chip_gen: v7x
topology: tpu7x:2x2x1
jax: 0.10.0
libtpu: 0.0.40
codegen_flags: <defaults>
</compile_context>

<pallas_src>
import jax
import jax.numpy as jnp
from jax.experimental import pallas as pl
from jax.experimental.pallas import tpu as pltpu

NUM_CLASSES = 2
FEAT_DIM = 512


def _round_up(a, m):
    return (a + m - 1) // m * m


def _sublane_multiple(dtype):
    # Minimum sublane tile by element width: 8 (4B), 16 (2B), 32 (1B).
    return {4: 8, 2: 16, 1: 32}.get(jnp.dtype(dtype).itemsize, 8)


def _make_center_loss_kernel(batch, num_classes, tile_b):
    # Only Python ints are closed over -> nothing is captured as a traced const.
    def kernel(x_ref, c_ref, labels_ref, out_ref):
        i = pl.program_id(0)

        x = x_ref[...].astype(jnp.float32)          # (TB, D)
        c = c_ref[...].astype(jnp.float32)          # (C, D)
        labels = labels_ref[...]                    # (TB, 1) int32

        # Per-row assigned center via a select chain over classes (VPU only,
        # no MXU push, no broadcasted (B, C) mask tile).
        # TODO(synk): labels outside [0, num_classes) fall back to class 0;
        # the PyTorch mask would instead contribute C clamped 1e-12 terms for
        # such a row.  Only matters for invalid label inputs.
        c_sel = c[0:1, :]                                            # (1, D)
        for j in range(1, num_classes):
            c_sel = jnp.where(labels == j, c[j:j + 1, :], c_sel)     # (TB, D)

        diff = x - c_sel
        d = jnp.sum(diff * diff, axis=1, keepdims=True)              # (TB, 1)
        d = jnp.clip(d, 1e-12, 1e12)                                 # torch.clamp

        # Ragged last tile: rows >= batch hold undefined data.  Keep this as a
        # *select* (not a multiply-by-mask) so NaN/Inf garbage cannot propagate.
        row = i * tile_b + jax.lax.broadcasted_iota(jnp.int32, (tile_b, 1), 0)
        d = jnp.where(row < batch, d, jnp.float32(0.0))

        out_ref[0, 0] = jnp.sum(d)                   # per-tile partial sum

    return kernel


def center_loss(x, centers, labels, *, tile_b=None):
    """x: (B, D) float, centers: (C, D) float, labels: (B,) int -> scalar f32."""
    B, D = x.shape
    C = centers.shape[0]

    sub = _sublane_multiple(x.dtype)
    if tile_b is None:
        # Whole (sublane-rounded) batch if small, 1024-row tiles otherwise.
        tile_b = 1024 if B > 1024 else _round_up(B, sub)
    else:
        tile_b = _round_up(tile_b, sub)
    n_tiles = pl.cdiv(B, tile_b)

    labels2d = labels.astype(jnp.int32).reshape(B, 1)

    kernel = _make_center_loss_kernel(B, C, tile_b)

    partials = pl.pallas_call(
        kernel,
        out_shape=jax.ShapeDtypeStruct((n_tiles, 1), jnp.float32),
        grid_spec=pltpu.PrefetchScalarGridSpec(
            num_scalar_prefetch=0,
            grid=(n_tiles,),
            in_specs=[
                pl.BlockSpec((tile_b, D), lambda i: (i, 0)),   # x tile (ragged last block ok)
                pl.BlockSpec((C, D), lambda i: (0, 0)),        # all centers, every step
                pl.BlockSpec((tile_b, 1), lambda i: (i, 0)),   # labels tile
            ],
            # One (1, 1) SMEM partial per grid step -> no cross-step accumulator.
            out_specs=pl.BlockSpec((1, 1), lambda i: (i, 0),
                                   memory_space=pltpu.SMEM),
        ),
        compiler_params=pltpu.CompilerParams(
            # Per-tile partials make the batch axis independent across steps,
            # so both v7x TensorCores can take disjoint tiles.
            dimension_semantics=("parallel",),
        ),
    )(x, centers, labels2d)

    # PyTorch clamps the B*(C-1) masked-out zeros to 1e-12 before summing;
    # fold that constant and the 1/B scale in here (cheap XLA scalar math).
    eps_pad = float(B * (C - 1) * 1e-12)
    inv_b = float(1.0 / B)
    return (jnp.sum(partials) + eps_pad) * inv_b


def center_loss_ref(x, centers, labels):
    """Pure-JAX reference mirroring the PyTorch forward (expansion + addmm)."""
    B = x.shape[0]
    C = centers.shape[0]
    distmat = (
        jnp.sum(x**2, axis=1, keepdims=True)
        + jnp.sum(centers**2, axis=1, keepdims=True).T
        - 2.0 * jnp.dot(x, centers.T, precision=jax.lax.Precision.HIGHEST)
    )
    mask = labels[:, None] == jnp.arange(C)[None, :]
    dist = jnp.where(mask, distmat, 0.0)
    dist = jnp.clip(dist, 1e-12, 1e12)
    return jnp.sum(dist) / B


if __name__ == "__main__":
    key = jax.random.PRNGKey(0)
    k_x, k_c, k_l = jax.random.split(key, 3)

    C, D = NUM_CLASSES, FEAT_DIM
    # Deterministic in-script parameter init (matches nn.Parameter(torch.randn(C, D))).
    centers = jax.random.normal(k_c, (C, D), dtype=jnp.float32)

    # (batch, forced tile) configs: single tile, ragged single tile, and a
    # multi-tile grid with a ragged last block (exercises the no-pad path).
    for B, forced_tile in ((8, None), (37, None), (40, 16)):
        kx = jax.random.fold_in(k_x, B)
        kl = jax.random.fold_in(k_l, B)
        x = jax.random.normal(kx, (B, D), dtype=jnp.float32)
        labels = jax.random.randint(kl, (B,), 0, C, dtype=jnp.int32)

        loss = jax.block_until_ready(center_loss(x, centers, labels, tile_b=forced_tile))
        ref = jax.block_until_ready(center_loss_ref(x, centers, labels))

        # Kernel uses the exact ||x - c||^2 form; reference uses the expansion
        # form, so allow small f32 cancellation noise vs a ~1e3-magnitude loss.
        assert jnp.allclose(loss, ref, rtol=1e-4, atol=1e-2), (B, loss, ref)

    print("KERNEL_OK")
</pallas_src>

<mosaic_0001>
module attributes {stable_mosaic.version = 11 : i64} {
  func.func @kernel(%arg0: i32, %arg1: memref<8x512xf32, #tpu.memory_space<vmem>>, %arg2: memref<2x512xf32, #tpu.memory_space<vmem>>, %arg3: memref<8x1xi32, #tpu.memory_space<vmem>>, %arg4: memref<1x1xf32, #tpu.memory_space<smem>>) attributes {dimension_semantics = [#tpu.dimension_semantics<parallel>], iteration_bounds = array<i64: 1>, scalar_prefetch = 0 : i64, scratch_operands = 0 : i64, tpu.core_type = #tpu.core_type<tc>, window_params = [{transform_indices = @transform_0, window_bounds = array<i64: 8, 512>}, {pipeline_mode = #tpu.pipeline_mode<synchronous>, transform_indices = @transform_1, window_bounds = array<i64: 2, 512>}, {transform_indices = @transform_2, window_bounds = array<i64: 8, 1>}, {transform_indices = @transform_3, window_bounds = array<i64: 1, 1>}]} {
    %c0 = arith.constant 0 : index
    %c0_0 = arith.constant 0 : index
    %0 = vector.load %arg1[%c0, %c0_0] : memref<8x512xf32, #tpu.memory_space<vmem>>, vector<8x512xf32>
    %c0_1 = arith.constant 0 : index
    %c0_2 = arith.constant 0 : index
    %1 = vector.load %arg2[%c0_1, %c0_2] : memref<2x512xf32, #tpu.memory_space<vmem>>, vector<2x512xf32>
    %c0_3 = arith.constant 0 : index
    %c0_4 = arith.constant 0 : index
    %2 = vector.load %arg3[%c0_3, %c0_4] : memref<8x1xi32, #tpu.memory_space<vmem>>, vector<8x1xi32>
    %3 = vector.extract_strided_slice %1 {offsets = [0, 0], sizes = [1, 512], strides = [1, 1]} : vector<2x512xf32> to vector<1x512xf32>
    %c1_i32 = arith.constant 1 : i32
    %4 = vector.broadcast %c1_i32 : i32 to vector<8x1xi32>
    %5 = arith.cmpi eq, %2, %4 : vector<8x1xi32>
    %6 = vector.extract_strided_slice %1 {offsets = [1, 0], sizes = [1, 512], strides = [1, 1]} : vector<2x512xf32> to vector<1x512xf32>
    %7 = vector.shape_cast %5 : vector<8x1xi1> to vector<8x1xi1>
    %8 = vector.broadcast %7 : vector<8x1xi1> to vector<8x512xi1>
    %9 = vector.shape_cast %6 : vector<1x512xf32> to vector<1x512xf32>
    %10 = vector.broadcast %9 : vector<1x512xf32> to vector<8x512xf32>
    %11 = vector.shape_cast %3 : vector<1x512xf32> to vector<1x512xf32>
    %12 = vector.broadcast %11 : vector<1x512xf32> to vector<8x512xf32>
    %13 = arith.select %8, %10, %12 : vector<8x512xi1>, vector<8x512xf32>
    %14 = arith.subf %0, %13 : vector<8x512xf32>
    %15 = arith.mulf %14, %14 : vector<8x512xf32>
    %cst = arith.constant dense<0.000000e+00> : vector<8xf32>
    %16 = vector.multi_reduction <add>, %15, %cst [1] : vector<8x512xf32> to vector<8xf32>
    %17 = vector.shape_cast %16 : vector<8xf32> to vector<8x1xf32>
    %cst_5 = arith.constant 9.99999996E-13 : f32
    %cst_6 = arith.constant 9.99999995E+11 : f32
    %18 = vector.broadcast %cst_5 : f32 to vector<8x1xf32>
    %19 = arith.maximumf %18, %17 : vector<8x1xf32>
    %20 = vector.broadcast %cst_6 : f32 to vector<8x1xf32>
    %21 = arith.minimumf %20, %19 : vector<8x1xf32>
    %c8_i32 = arith.constant 8 : i32
    %22 = arith.muli %arg0, %c8_i32 : i32
    %23 = tpu.iota {dimensions = array<i32: 0>} : vector<8x1xi32>
    %24 = vector.broadcast %22 : i32 to vector<8x1xi32>
    %25 = arith.addi %24, %23 : vector<8x1xi32>
    %c8_i32_7 = arith.constant 8 : i32
    %26 = vector.broadcast %c8_i32_7 : i32 to vector<8x1xi32>
    %27 = arith.cmpi slt, %25, %26 : vector<8x1xi32>
    %cst_8 = arith.constant 0.000000e+00 : f32
    %28 = vector.broadcast %cst_8 : f32 to vector<8x1xf32>
    %29 = arith.select %27, %21, %28 : vector<8x1xi1>, vector<8x1xf32>
    %30 = vector.shape_cast %29 : vector<8x1xf32> to vector<1x8x1xf32>
    %cst_9 = arith.constant dense<0.000000e+00> : vector<1xf32>
    %31 = vector.multi_reduction <add>, %30, %cst_9 [1, 2] : vector<1x8x1xf32> to vector<1xf32>
    %32 = vector.shape_cast %31 : vector<1xf32> to vector<1x1x1xf32>
    %33 = vector.extract %32[0, 0, 0] : f32 from vector<1x1x1xf32>
    %c0_10 = arith.constant 0 : index
    %c0_11 = arith.constant 0 : index
    %34 = memref.load %arg4[%c0_10, %c0_11] : memref<1x1xf32, #tpu.memory_space<smem>>
    memref.store %33, %arg4[%c0_10, %c0_11] : memref<1x1xf32, #tpu.memory_space<smem>>
    return
  }
  func.func @transform_0(%arg0: i32) -> (i32, i32) {
    %c0_i32 = arith.constant 0 : i32
    %c0_i32_0 = arith.constant 0 : i32
    return %arg0, %c0_i32 : i32, i32
  }
  func.func @transform_1(%arg0: i32) -> (i32, i32) {
    %c0_i32 = arith.constant 0 : i32
    %c0_i32_0 = arith.constant 0 : i32
    %c0_i32_1 = arith.constant 0 : i32
    return %c0_i32, %c0_i32_0 : i32, i32
  }
  func.func @transform_2(%arg0: i32) -> (i32, i32) {
    %c0_i32 = arith.constant 0 : i32
    %c0_i32_0 = arith.constant 0 : i32
    return %arg0, %c0_i32 : i32, i32
  }
  func.func @transform_3(%arg0: i32) -> (i32, i32) {
    %c0_i32 = arith.constant 0 : i32
    %c0_i32_0 = arith.constant 0 : i32
    return %arg0, %c0_i32 : i32, i32
  }
}

</mosaic_0001>

<bundles_post_ra>
// kernel: tpu_custom_call.1
= control target key start
LH: loop header
LB: loop body
LE: loop exit
PB: predicated region body
PF: predicated region fallthrough
CT: control target
= control target key end

     0   :  { %8 = vsyncpa [#allocation3], 0  ;;  %s260_s0 = inlined_call_operand.hbm [shape: f32[8,512], index: 0, kind: input, shape index: {}]   ;;  %s261_s1 = inlined_call_operand.vmem [shape: f32[2,512], index: 1, kind: input, shape index: {}]   ;;  %s262_s2 = inlined_call_operand.vmem [shape: s32[8,1], index: 2, kind: input, shape index: {}]   ;;  %s263_s3 = inlined_call_operand.hbm [shape: f32[1,1], index: 3, kind: output, shape index: {}]  }
   0x1   :  { %9 = vsyncpa [#allocation4], 0  ;;  %s207_s12 = smov [#allocation2]   ;;  %s171_s16 = scalar_lea.hbm %s260_s0, 512 }
   0x2   :  { %s16_s13 = sshll.u32 %s207_s12, 4  ;;  %p172_p0 = scmp.ne.s32.totalorder %s260_s0, %s171_s16  ;;  %s17_s13 = int_to_ptr.vmem [resolvable:$true] %s16_s13 }
   0x3   :  { %p175_p1 = scmp.lt.u32.totalorder %s171_s16, %s260_s0 }
   0x5   :  { %p177_p2 = pnand %p175_p1, %p172_p0 }
   0x7   :  { %180 = shalt.err (!%p177_p2)
}
   0x8   :  { %s181_s21 = scalar_lea.vmem %s17_s13, 512  ;;  %p186_p4 = scmp.lt.s32.totalorder %s17_s13, %s17_s13 }
   0x9   :  { %p182_p3 = scmp.ne.s32.totalorder %s17_s13, %s181_s21  ;;  %p187_p5 = scmp.lt.s32.totalorder %s181_s21, %s181_s21 }
   0xb   :  { %p188_p6 = por %p187_p5, %p186_p4 }
   0xd   :  { %p189_p7 = pnand %p188_p6, %p182_p3 }
   0xf   :  { %192 = shalt.err (!%p189_p7)
}
  0x10   :  { %19 = dma.hbm_to_vmem [thread:$0]  %s260_s0, 512, %s17_s13, [#allocation3]  }
  0x11   :  { %203 = dma.done.wait [#allocation3], 512  }
  0x12   :  { %204 = vsyncadd [#allocation3], 4294966784  ;;  %v208_v0 = vmov 0   ;;  %v32_v1 = vld [vmem:[%s262_s2] sm:$0xff]  ;;  %v40_v3 = vlaneseq  ;;  %v28_v32 = vld [vmem:[#allocation2 + $0x8] sm:$0xff]  ;;  %vm138_vm2 = vcmask 7168  }
  0x13   :  { %170 = vset.pattern.permute.xlu0 %v208_v0  ;;  %vm33_vm0 = vcmp.eq.s32.totalorder %v32_v1, 1  ;;  %v31_v13 = vld [vmem:[%s261_s1] sm:$0xff]  ;;  %v29_v33 = vld [vmem:[#allocation2 + $0x10] sm:$0xff]  ;;  %v30_v38 = vld [vmem:[#allocation2 + $0x18] sm:$0xff]  ;;  %s193_s28 = scalar_lea.hbm %s263_s3, 16 }
  0x14   :  { %v34_v2 = vsel %vm33_vm0, 1, %v208_v0  ;;  %v41_v4 = vshrl.u32 %v40_v3, 7  ;;  %v27_v31 = vld [vmem:[#allocation2] sm:$0xff]  ;;  %p194_p8 = scmp.ne.s32.totalorder %s263_s3, %s193_s28  ;;  %p197_p9 = scmp.lt.u32.totalorder %s193_s28, %s263_s3 }
  0x15   :  { %36 = vperm.xlu0 %170, %v34_v2  }
  0x16   :  { %v42_v5 = vsub.s32 1, %v41_v4  ;;  %v46_v6 = vsub.s32 3, %v41_v4  ;;  %v50_v7 = vsub.s32 5, %v41_v4  ;;  %v54_v8 = vsub.s32 7, %v41_v4  ;;  %p199_p10 = pnand %p197_p9, %p194_p8 }
  0x17   :  { %v78_v9 = vsub.s32 0, %v41_v4  ;;  %v82_v10 = vsub.s32 2, %v41_v4  ;;  %v86_v11 = vsub.s32 4, %v41_v4  ;;  %v90_v12 = vsub.s32 6, %v41_v4 }
  0x18   :  { %v43_v14 = vrot.slane %v31_v13, %v42_v5  ;;  %v47_v15 = vrot.slane %v31_v13, %v46_v6  ;;  %v51_v16 = vrot.slane %v31_v13, %v50_v7  ;;  %v55_v17 = vrot.slane %v31_v13, %v54_v8 }
  0x19   :  { %v79_v18 = vrot.slane %v31_v13, %v78_v9  ;;  %v83_v19 = vrot.slane %v31_v13, %v82_v10  ;;  %v87_v20 = vrot.slane %v31_v13, %v86_v11  ;;  %v91_v21 = vrot.slane %v31_v13, %v90_v12 }
  0x1a   :  { %v63_v22 = vrot.slane %v43_v14, %v42_v5  ;;  %v67_v23 = vrot.slane %v47_v15, %v42_v5  ;;  %v71_v24 = vrot.slane %v51_v16, %v42_v5  ;;  %v75_v25 = vrot.slane %v55_v17, %v42_v5 }
  0x1b   :  { %v99_v26 = vrot.slane %v79_v18, %v78_v9  ;;  %v103_v27 = vrot.slane %v83_v19, %v78_v9  ;;  %v107_v28 = vrot.slane %v87_v20, %v78_v9  ;;  %v111_v29 = vrot.slane %v91_v21, %v78_v9 }
  0x94   :  { %v37_v30 = vpop.permute.xlu0 %36 }
  0x95   :  { %vm38_vm1 = vcmp.eq.s32.totalorder %v37_v30, 1 }
  0x96   :  { %v112_v34 = vsel %vm38_vm1, %v63_v22, %v99_v26  ;;  %v113_v35 = vsel %vm38_vm1, %v67_v23, %v103_v27  ;;  %v114_v36 = vsel %vm38_vm1, %v71_v24, %v107_v28  ;;  %v115_v37 = vsel %vm38_vm1, %v75_v25, %v111_v29 }
  0x97   :  { %v116_v39 = vsub.f32 %v27_v31, %v112_v34  ;;  %v117_v40 = vsub.f32 %v28_v32, %v113_v35  ;;  %v118_v41 = vsub.f32 %v29_v33, %v114_v36  ;;  %v119_v44 = vsub.f32 %v30_v38, %v115_v37 }
  0x99   :  { %v120_v42 = vmul.f32 %v116_v39, %v116_v39  ;;  %v121_v43 = vmul.f32 %v117_v40, %v117_v40  ;;  %v122_v45 = vmul.f32 %v118_v41, %v118_v41  ;;  %v123_v47 = vmul.f32 %v119_v44, %v119_v44 }
  0x9b   :  { %v124_v46 = vadd.f32 %v121_v43, %v120_v42 }
  0x9d   :  { %v125_v48 = vadd.f32 %v124_v46, %v122_v45 }
  0x9f   :  { %v126_v49 = vadd.f32 %v125_v48, %v123_v47 }
  0xa1   :  { %127 = vadd.xlane.f32.xlu0 %v126_v49 }
 0x12e   :  { %v128_v50 = vpop.xlane.xlu0 %127 }
 0x12f   :  { %v129_v51 = vmax.f32 %v128_v50, 1e-12 }
 0x131   :  { %v130_v52 = vmin.f32 %v129_v51, 1e+12 }
 0x133   :  { %v139_v53 = vsel %vm138_vm2, %v130_v52, 0.0 }
 0x134   :  { %140 = vadd.xlane.f32.xlu1 %v139_v53 }
 0x1c1   :  { %v141_v54 = vpop.xlane.xlu1 %140 }
 0x1c2   :  { %v142_v55 = vrot.slane %v141_v54, 4 }
 0x1c4   :  { %v143_v56 = vadd.f32 %v142_v55, %v141_v54 }
 0x1c6   :  { %v144_v57 = vrot.slane %v143_v56, 2 }
 0x1c8   :  { %v145_v58 = vadd.f32 %v144_v57, %v143_v56 }
 0x1ca   :  { %v146_v59 = vrot.slane %v145_v58, 1 }
 0x1cc   :  { %v147_v60 = vadd.f32 %v146_v59, %v145_v58 }
 0x1ce   :  { %165 = vpush %v147_v60 }
 0x1ff   :  { %s166_s1 = spop %165 }
 0x200   :  { %150 = sst [smem:[#allocation5]] %s166_s1 }
 0x201   :  { %202 = shalt.err (!%p199_p10)
}
 0x202   :  { %s209_s6 = smov [#allocation5]  }
 0x203   :  { %158 = dma.smem_to_hbm %s209_s6, 16, %s263_s3, [#allocation4]  }
 0x204   :  { %205 = dma.done.wait [#allocation4], 16  }
 0x205   :  { %206 = vsyncadd [#allocation4], 4294967280 }
 0x206   :  { %162 = sfence }
 0x207   :  { %163 = vsyncpa [#allocation3], 1 }
 0x208   :  { %164 = vsyncpa [#allocation4], 1 }

</bundles_post_ra>
